<compile_context>
chip_gen: v5e
topology: v5e:2x2
jax: 0.10.0
libtpu: 0.0.40
codegen_flags: <defaults>
</compile_context>

<pallas_src>
import math

import jax
import jax.numpy as jnp
from jax.experimental import pallas as pl
from jax.experimental.pallas import tpu as pltpu

_NEG_INF = -1.0e30       # finite "-inf" for the running max (no inf-inf NaNs)
_MASK_VALUE = -1.0e9     # matches masked_fill_(-1e9) in the PyTorch module


# ---------------------------------------------------------------------------
# Hardware-aware configuration helpers
# ---------------------------------------------------------------------------

def _vmem_limit_bytes():
    """Scoped-VMEM cap: ~3/4 of physical VMEM, at most 100 MiB.

    v5e/v6e (128 MiB physical) -> 96 MiB; v7x (64 MiB / TC) -> 48 MiB.
    Falls back to a conservative 48 MiB when the query is unavailable
    (e.g. interpret mode on CPU, where the value is ignored anyway).
    """
    try:
        info = pltpu.get_tpu_info()
        cap = getattr(info, "vmem_capacity_bytes", None)
        if cap:
            return min(int(cap) * 3 // 4, 100 * 1024 * 1024)
    except Exception:
        pass
    return 48 * 1024 * 1024


def _is_v5e():
    try:
        kind = jax.devices()[0].device_kind.lower()
        return ("v5 lite" in kind) or ("v5e" in kind) or ("v5litepod" in kind)
    except Exception:
        return False


def _tile_candidates(n, cap, align):
    """Divisors of n that are `align`-aligned (or the full n), descending."""
    cands = [t for t in range(min(n, cap), 0, -1)
             if n % t == 0 and (t % align == 0 or t == n)]
    return cands or [n]


def _choose_tiles(H, Lq, Lk, D, Dv, in_bytes, out_bytes, has_mask, budget,
                  tq_cap, tkv_cap, head_cap=None):
    """Pick (head_tile, q_tile, kv_tile) maximizing q_tile (fewest K/V
    restreams), then kv_tile, then head_tile, under a VMEM budget."""
    tq_cands = _tile_candidates(Lq, tq_cap, 8)
    tkv_cands = _tile_candidates(Lk, tkv_cap, 128)   # mask last dim: %128 or full
    h_top = H if head_cap is None else max(1, min(H, head_cap))
    th_cands = [t for t in range(h_top, 0, -1) if H % t == 0]

    def est(th, tq, tkv):
        s_bytes = th * tq * tkv * 4                       # f32 scores / probs
        return (4 * s_bytes                               # spilled intermediates
                + 2 * th * tq * D * in_bytes              # q (double-buffered)
                + 2 * th * tkv * (D + Dv) * in_bytes      # k + v
                + (2 * tq * tkv if has_mask else 0)       # int8 mask
                + 2 * th * tq * Dv * out_bytes            # out
                + th * tq * D * in_bytes                  # scaled-q scratch
                + 2 * th * tq * 128 * 4                   # m / l (lane padded)
                + th * tq * Dv * 4)                       # acc scratch

    for th in th_cands:
        for tq in tq_cands:
            for tkv in tkv_cands:
                if est(th, tq, tkv) <= budget:
                    return th, tq, tkv
    return th_cands[-1], tq_cands[-1], tkv_cands[-1]


# ---------------------------------------------------------------------------
# Kernel
# ---------------------------------------------------------------------------

def _make_kernel(scale, has_mask, exp_dtype):
    def kernel(*refs):
        if has_mask:
            (q_ref, k_ref, v_ref, mask_ref, o_ref,
             qs_sc, m_sc, l_sc, acc_sc) = refs
        else:
            (q_ref, k_ref, v_ref, o_ref,
             qs_sc, m_sc, l_sc, acc_sc) = refs

        kv_idx = pl.program_id(3)

        # Per-(batch, head-tile, q-tile) init: cache the 1/sqrt(D)-scaled q
        # tile once (instead of scaling the (th, tq, tkv) scores every kv
        # step) and reset the online-softmax state.
        @pl.when(kv_idx == 0)
        def _():
            qs_sc[...] = (q_ref[0].astype(jnp.float32)
                          * jnp.float32(scale)).astype(qs_sc.dtype)
            m_sc[...] = jnp.full(m_sc.shape, _NEG_INF, jnp.float32)
            l_sc[...] = jnp.zeros(l_sc.shape, jnp.float32)
            acc_sc[...] = jnp.zeros(acc_sc.shape, jnp.float32)

        q = qs_sc[...]           # (th, tq, D), already scaled
        k = k_ref[0]             # (th, tkv, D)
        v = v_ref[0]             # (th, tkv, Dv)

        # s = (q / sqrt(D)) @ k^T: contract the last dims of both operands so
        # the MXU is fed directly (no k transpose / relayout).
        s = jax.lax.dot_general(
            q, k, dimension_numbers=(((2,), (2,)), ((0,), (0,))),
            preferred_element_type=jnp.float32)           # (th, tq, tkv) f32

        if has_mask:
            keep = mask_ref[0] != 0                       # (tq, tkv) int8
            s = jnp.where(keep[None, :, :], s, jnp.float32(_MASK_VALUE))

        # Online (flash) softmax update; m/l/acc state stays f32.
        m_prev = m_sc[...]                                # (th, tq, 1)
        m_new = jnp.maximum(m_prev, jnp.max(s, axis=-1, keepdims=True))
        alpha = jnp.exp(m_prev - m_new)                   # (th, tq, 1) f32
        p = jnp.exp((s - m_new).astype(exp_dtype))        # bf16 EUP on v6e/v7x

        l_sc[...] = alpha * l_sc[...] + jnp.sum(
            p.astype(jnp.float32), axis=-1, keepdims=True)
        pv = jax.lax.dot_general(
            p.astype(v.dtype), v,
            dimension_numbers=(((2,), (1,)), ((0,), (0,))),
            preferred_element_type=jnp.float32)           # (th, tq, Dv) f32
        acc_sc[...] = alpha * acc_sc[...] + pv
        m_sc[...] = m_new

        @pl.when(kv_idx == pl.num_programs(3) - 1)
        def _():
            # Exact division once per q tile (approx reciprocal drifted past
            # the f32 parity tolerance vs. the PyTorch/JAX reference).
            o_ref[0] = (acc_sc[...] / l_sc[...]).astype(o_ref.dtype)

    return kernel


# ---------------------------------------------------------------------------
# Wrapper
# ---------------------------------------------------------------------------

def scaled_dot_product_attention(q, k, v, attn_mask=None, *,
                                 q_tile=None, kv_tile=None, head_tile=None):
    """Pallas TPU flash attention matching ScaledDotProductAttention.forward.

    q, k, v: (B, L, D) or (B, H, L, D); attn_mask: optional (B, L_q, L_k)
    (entries equal to 0 are masked out).  Returns the same layout as q.
    q_tile / kv_tile / head_tile are optional upper bounds on the
    automatically chosen tile sizes.
    """
    squeeze_heads = (q.ndim == 3)
    if squeeze_heads:
        q, k, v = q[:, None], k[:, None], v[:, None]

    B, H, Lq, D = q.shape
    Lk = k.shape[2]
    Dv = v.shape[3]
    has_mask = attn_mask is not None

    vmem_limit = _vmem_limit_bytes()
    budget = (vmem_limit * 7) // 10          # headroom for pipeline + spills
    in_bytes = q.dtype.itemsize
    out_bytes = in_bytes
    v5e = _is_v5e()

    tq_cap = 512 if q_tile is None else max(1, int(q_tile))
    tkv_cap = (128 if v5e else 256) if kv_tile is None else max(1, int(kv_tile))
    th, tq, tkv = _choose_tiles(H, Lq, Lk, D, Dv, in_bytes, out_bytes,
                                has_mask, budget, tq_cap, tkv_cap,
                                head_cap=head_tile)

    # Keep >= 2 steps on the parallel grid axes so both v7x TensorCores
    # (which share the 3.2 TB/s HBM) get work.
    if B * (H // th) * (Lq // tq) < 2:
        for cand in _tile_candidates(Lq, tq_cap, 8):
            if cand < tq and Lq // cand >= 2:
                tq = cand
                break

    grid = (B, H // th, Lq // tq, Lk // tkv)
    scale = 1.0 / math.sqrt(D)
    exp_dtype = (jnp.bfloat16
                 if (q.dtype == jnp.bfloat16 and not v5e) else jnp.float32)
    kernel = _make_kernel(scale, has_mask, exp_dtype)

    in_specs = [
        pl.BlockSpec((1, th, tq, D), lambda b, h, i, j: (b, h, i, 0)),
        pl.BlockSpec((1, th, tkv, D), lambda b, h, i, j: (b, h, j, 0)),
        pl.BlockSpec((1, th, tkv, Dv), lambda b, h, i, j: (b, h, j, 0)),
    ]
    inputs = [q, k, v]
    if has_mask:
        # int8 mask: 1 byte/element of HBM traffic instead of 4, shared
        # across all heads of a grid step.
        mask_i8 = (attn_mask != 0).astype(jnp.int8)
        in_specs.append(pl.BlockSpec((1, tq, tkv), lambda b, h, i, j: (b, i, j)))
        inputs.append(mask_i8)

    out = pl.pallas_call(
        kernel,
        out_shape=jax.ShapeDtypeStruct((B, H, Lq, Dv), q.dtype),
        grid_spec=pltpu.PrefetchScalarGridSpec(
            num_scalar_prefetch=0,
            grid=grid,
            in_specs=in_specs,
            out_specs=pl.BlockSpec((1, th, tq, Dv),
                                   lambda b, h, i, j: (b, h, i, 0)),
            scratch_shapes=[
                pltpu.VMEM((th, tq, D), q.dtype),       # q * 1/sqrt(D) cache
                pltpu.VMEM((th, tq, 1), jnp.float32),   # running max m
                pltpu.VMEM((th, tq, 1), jnp.float32),   # running denom l
                pltpu.VMEM((th, tq, Dv), jnp.float32),  # output accumulator
            ],
        ),
        compiler_params=pltpu.CompilerParams(
            dimension_semantics=("parallel", "parallel", "parallel",
                                 "arbitrary"),
            vmem_limit_bytes=vmem_limit,
        ),
    )(*inputs)

    if squeeze_heads:
        out = out[:, 0]
    return out


# ---------------------------------------------------------------------------
# Reference + smoke test
# ---------------------------------------------------------------------------

def _reference(q, k, v, attn_mask=None):
    # precision=HIGHEST: true f32 ground truth (XLA's default f32 matmul on
    # TPU is a single bf16 pass, which is *less* accurate than the kernel).
    hi = jax.lax.Precision.HIGHEST
    qf, kf, vf = (x.astype(jnp.float32) for x in (q, k, v))
    att = jnp.einsum("...ld,...md->...lm", qf, kf,
                     precision=hi) / math.sqrt(q.shape[-1])
    if attn_mask is not None:
        mask = attn_mask
        if q.ndim == 4:
            mask = mask[:, None]
        att = jnp.where(mask == 0, _MASK_VALUE, att)
    att = jax.nn.softmax(att, axis=-1)
    return jnp.einsum("...lm,...md->...ld", att, vf, precision=hi)


if __name__ == "__main__":
    key = jax.random.PRNGKey(0)
    kq, kk, kv_, km, kq2, kk2, kv2, km2 = jax.random.split(key, 8)

    # Small BERT-ish shapes (single tile per axis).
    B, H, L, D = 2, 4, 8, 32
    q = jax.random.normal(kq, (B, H, L, D), dtype=jnp.float32)
    k = jax.random.normal(kk, (B, H, L, D), dtype=jnp.float32)
    v = jax.random.normal(kv_, (B, H, L, D), dtype=jnp.float32)
    attn_mask = (jax.random.uniform(km, (B, L, L)) > 0.3).astype(jnp.float32)

    out = jax.block_until_ready(scaled_dot_product_attention(q, k, v, attn_mask))
    ref = _reference(q, k, v, attn_mask)
    assert out.shape == q.shape
    assert jnp.allclose(out, ref, atol=5e-3, rtol=5e-3), "mismatch (masked, 4-D)"

    out_nm = jax.block_until_ready(scaled_dot_product_attention(q, k, v, None))
    ref_nm = _reference(q, k, v, None)
    assert jnp.allclose(out_nm, ref_nm, atol=5e-3, rtol=5e-3), "mismatch (unmasked)"

    # 3-D (B, L, D) path.
    q3, k3, v3 = q[:, 0], k[:, 0], v[:, 0]
    out3 = jax.block_until_ready(scaled_dot_product_attention(q3, k3, v3, attn_mask))
    ref3 = _reference(q3, k3, v3, attn_mask)
    assert out3.shape == q3.shape
    assert jnp.allclose(out3, ref3, atol=5e-3, rtol=5e-3), "mismatch (masked, 3-D)"

    # Larger sequence; force 128-wide tiles to exercise the multi-tile
    # online-softmax accumulation path (2x2 q/kv tiles).
    B2, H2, L2, D2 = 2, 4, 256, 64
    q2 = jax.random.normal(kq2, (B2, H2, L2, D2), dtype=jnp.float32)
    k2 = jax.random.normal(kk2, (B2, H2, L2, D2), dtype=jnp.float32)
    v2 = jax.random.normal(kv2, (B2, H2, L2, D2), dtype=jnp.float32)
    mask2 = (jax.random.uniform(km2, (B2, L2, L2)) > 0.3).astype(jnp.float32)
    out2 = jax.block_until_ready(
        scaled_dot_product_attention(q2, k2, v2, mask2, q_tile=128, kv_tile=128))
    ref2 = _reference(q2, k2, v2, mask2)
    assert jnp.allclose(out2, ref2, atol=5e-3, rtol=5e-3), "mismatch (masked, tiled)"

    # bf16 inputs, auto (large single) tiles: bf16 MXU matmuls + bf16 exp.
    qb, kb, vb = (x.astype(jnp.bfloat16) for x in (q2, k2, v2))
    outb = jax.block_until_ready(scaled_dot_product_attention(qb, kb, vb, mask2))
    refb = _reference(qb, kb, vb, mask2)
    assert jnp.allclose(outb.astype(jnp.float32), refb, atol=3e-2, rtol=3e-2), \
        "mismatch (bf16)"

    print("KERNEL_OK")
</pallas_src>

<mosaic_0001>
module attributes {stable_mosaic.version = 11 : i64} {
  func.func @kernel(%arg0: i32, %arg1: i32, %arg2: i32, %arg3: i32, %arg4: memref<1x4x8x32xf32, #tpu.memory_space<vmem>>, %arg5: memref<1x4x8x32xf32, #tpu.memory_space<vmem>>, %arg6: memref<1x4x8x32xf32, #tpu.memory_space<vmem>>, %arg7: memref<1x8x8xi8, #tpu.memory_space<vmem>>, %arg8: memref<1x4x8x32xf32, #tpu.memory_space<vmem>>, %arg9: memref<4x8x32xf32, #tpu.memory_space<vmem>>, %arg10: memref<4x8x1xf32, #tpu.memory_space<vmem>>, %arg11: memref<4x8x1xf32, #tpu.memory_space<vmem>>, %arg12: memref<4x8x32xf32, #tpu.memory_space<vmem>>) attributes {dimension_semantics = [#tpu.dimension_semantics<parallel>, #tpu.dimension_semantics<parallel>, #tpu.dimension_semantics<parallel>, #tpu.dimension_semantics<arbitrary>], iteration_bounds = array<i64: 2, 1, 1, 1>, scalar_prefetch = 0 : i64, scratch_operands = 4 : i64, tpu.core_type = #tpu.core_type<tc>, window_params = [{transform_indices = @transform_0, window_bounds = array<i64: 1, 4, 8, 32>}, {transform_indices = @transform_1, window_bounds = array<i64: 1, 4, 8, 32>}, {transform_indices = @transform_2, window_bounds = array<i64: 1, 4, 8, 32>}, {transform_indices = @transform_3, window_bounds = array<i64: 1, 8, 8>}, {transform_indices = @transform_4, window_bounds = array<i64: 1, 4, 8, 32>}]} {
    %c0_i32 = arith.constant 0 : i32
    %0 = arith.cmpi eq, %arg3, %c0_i32 : i32
    %1 = arith.extui %0 : i1 to i32
    %c0_i32_0 = arith.constant 0 : i32
    %2 = arith.cmpi ne, %1, %c0_i32_0 : i32
    scf.if %2 {
      %c0_38 = arith.constant 0 : index
      %c0_39 = arith.constant 0 : index
      %c0_40 = arith.constant 0 : index
      %c0_41 = arith.constant 0 : index
      %43 = vector.load %arg4[%c0_38, %c0_39, %c0_40, %c0_41] : memref<1x4x8x32xf32, #tpu.memory_space<vmem>>, vector<1x4x8x32xf32>
      %44 = vector.shape_cast %43 : vector<1x4x8x32xf32> to vector<4x8x32xf32>
      %cst_42 = arith.constant 0.176776692 : f32
      %45 = vector.broadcast %cst_42 : f32 to vector<4x8x32xf32>
      %46 = arith.mulf %44, %45 : vector<4x8x32xf32>
      %c0_43 = arith.constant 0 : index
      %c0_44 = arith.constant 0 : index
      %c0_45 = arith.constant 0 : index
      %47 = vector.load %arg9[%c0_43, %c0_44, %c0_45] : memref<4x8x32xf32, #tpu.memory_space<vmem>>, vector<4x8x32xf32>
      tpu.vector_store %arg9[%c0_43, %c0_44, %c0_45], %46 {strides = array<i32>} : memref<4x8x32xf32, #tpu.memory_space<vmem>>, vector<4x8x32xf32>,
      %cst_46 = arith.constant -1.000000e+30 : f32
      %48 = vector.broadcast %cst_46 : f32 to vector<4x8x1xf32>
      %c0_47 = arith.constant 0 : index
      %c0_48 = arith.constant 0 : index
      %c0_49 = arith.constant 0 : index
      %49 = vector.load %arg10[%c0_47, %c0_48, %c0_49] : memref<4x8x1xf32, #tpu.memory_space<vmem>>, vector<4x8x1xf32>
      tpu.vector_store %arg10[%c0_47, %c0_48, %c0_49], %48 {strides = array<i32>} : memref<4x8x1xf32, #tpu.memory_space<vmem>>, vector<4x8x1xf32>,
      %cst_50 = arith.constant 0.000000e+00 : f32
      %50 = vector.broadcast %cst_50 : f32 to vector<4x8x1xf32>
      %c0_51 = arith.constant 0 : index
      %c0_52 = arith.constant 0 : index
      %c0_53 = arith.constant 0 : index
      %51 = vector.load %arg11[%c0_51, %c0_52, %c0_53] : memref<4x8x1xf32, #tpu.memory_space<vmem>>, vector<4x8x1xf32>
      tpu.vector_store %arg11[%c0_51, %c0_52, %c0_53], %50 {strides = array<i32>} : memref<4x8x1xf32, #tpu.memory_space<vmem>>, vector<4x8x1xf32>,
      %cst_54 = arith.constant 0.000000e+00 : f32
      %52 = vector.broadcast %cst_54 : f32 to vector<4x8x32xf32>
      %c0_55 = arith.constant 0 : index
      %c0_56 = arith.constant 0 : index
      %c0_57 = arith.constant 0 : index
      %53 = vector.load %arg12[%c0_55, %c0_56, %c0_57] : memref<4x8x32xf32, #tpu.memory_space<vmem>>, vector<4x8x32xf32>
      tpu.vector_store %arg12[%c0_55, %c0_56, %c0_57], %52 {strides = array<i32>} : memref<4x8x32xf32, #tpu.memory_space<vmem>>, vector<4x8x32xf32>,
    } else {
    }
    %c0 = arith.constant 0 : index
    %c0_1 = arith.constant 0 : index
    %c0_2 = arith.constant 0 : index
    %3 = vector.load %arg9[%c0, %c0_1, %c0_2] : memref<4x8x32xf32, #tpu.memory_space<vmem>>, vector<4x8x32xf32>
    %c0_3 = arith.constant 0 : index
    %c0_4 = arith.constant 0 : index
    %c0_5 = arith.constant 0 : index
    %c0_6 = arith.constant 0 : index
    %4 = vector.load %arg5[%c0_3, %c0_4, %c0_5, %c0_6] : memref<1x4x8x32xf32, #tpu.memory_space<vmem>>, vector<1x4x8x32xf32>
    %5 = vector.shape_cast %4 : vector<1x4x8x32xf32> to vector<4x8x32xf32>
    %c0_7 = arith.constant 0 : index
    %c0_8 = arith.constant 0 : index
    %c0_9 = arith.constant 0 : index
    %c0_10 = arith.constant 0 : index
    %6 = vector.load %arg6[%c0_7, %c0_8, %c0_9, %c0_10] : memref<1x4x8x32xf32, #tpu.memory_space<vmem>>, vector<1x4x8x32xf32>
    %7 = vector.shape_cast %6 : vector<1x4x8x32xf32> to vector<4x8x32xf32>
    %cst = arith.constant dense<0.000000e+00> : vector<4x8x8xf32>
    %8 = tpu.matmul %3, %5, %cst {dimension_numbers = #tpu.dot_dimension_numbers<[2], [2], [1], [1], [0, 0, 0, 1, 1, 1], [0], [0]>} : vector<4x8x32xf32>, vector<4x8x32xf32>, vector<4x8x8xf32> -> vector<4x8x8xf32>
    %c0_11 = arith.constant 0 : index
    %c0_12 = arith.constant 0 : index
    %c0_13 = arith.constant 0 : index
    %9 = vector.load %arg7[%c0_11, %c0_12, %c0_13] : memref<1x8x8xi8, #tpu.memory_space<vmem>>, vector<1x8x8xi8>
    %10 = vector.shape_cast %9 : vector<1x8x8xi8> to vector<8x8xi8>
    %c0_i8 = arith.constant 0 : i8
    %11 = vector.broadcast %c0_i8 : i8 to vector<8x8xi8>
    %12 = arith.cmpi ne, %10, %11 : vector<8x8xi8>
    %13 = vector.shape_cast %12 : vector<8x8xi1> to vector<1x8x8xi1>
    %cst_14 = arith.constant -1.000000e+09 : f32
    %14 = vector.shape_cast %13 : vector<1x8x8xi1> to vector<1x8x8xi1>
    %15 = vector.broadcast %14 : vector<1x8x8xi1> to vector<4x8x8xi1>
    %16 = vector.broadcast %cst_14 : f32 to vector<4x8x8xf32>
    %17 = arith.select %15, %8, %16 : vector<4x8x8xi1>, vector<4x8x8xf32>
    %c0_15 = arith.constant 0 : index
    %c0_16 = arith.constant 0 : index
    %c0_17 = arith.constant 0 : index
    %18 = vector.load %arg10[%c0_15, %c0_16, %c0_17] : memref<4x8x1xf32, #tpu.memory_space<vmem>>, vector<4x8x1xf32>
    %cst_18 = arith.constant dense<0xFF800000> : vector<4x8xf32>
    %19 = vector.multi_reduction <maximumf>, %17, %cst_18 [2] : vector<4x8x8xf32> to vector<4x8xf32>
    %20 = vector.shape_cast %19 : vector<4x8xf32> to vector<4x8x1xf32>
    %21 = arith.maximumf %18, %20 : vector<4x8x1xf32>
    %22 = arith.subf %18, %21 : vector<4x8x1xf32>
    %23 = math.exp %22 : vector<4x8x1xf32>
    %24 = vector.broadcast %21 : vector<4x8x1xf32> to vector<4x8x8xf32>
    %25 = arith.subf %17, %24 : vector<4x8x8xf32>
    %26 = math.exp %25 : vector<4x8x8xf32>
    %c0_19 = arith.constant 0 : index
    %c0_20 = arith.constant 0 : index
    %c0_21 = arith.constant 0 : index
    %27 = vector.load %arg11[%c0_19, %c0_20, %c0_21] : memref<4x8x1xf32, #tpu.memory_space<vmem>>, vector<4x8x1xf32>
    %28 = arith.mulf %23, %27 : vector<4x8x1xf32>
    %cst_22 = arith.constant dense<0.000000e+00> : vector<4x8xf32>
    %29 = vector.multi_reduction <add>, %26, %cst_22 [2] : vector<4x8x8xf32> to vector<4x8xf32>
    %30 = vector.shape_cast %29 : vector<4x8xf32> to vector<4x8x1xf32>
    %31 = arith.addf %28, %30 : vector<4x8x1xf32>
    %c0_23 = arith.constant 0 : index
    %c0_24 = arith.constant 0 : index
    %c0_25 = arith.constant 0 : index
    %32 = vector.load %arg11[%c0_23, %c0_24, %c0_25] : memref<4x8x1xf32, #tpu.memory_space<vmem>>, vector<4x8x1xf32>
    tpu.vector_store %arg11[%c0_23, %c0_24, %c0_25], %31 {strides = array<i32>} : memref<4x8x1xf32, #tpu.memory_space<vmem>>, vector<4x8x1xf32>,
    %cst_26 = arith.constant dense<0.000000e+00> : vector<4x8x32xf32>
    %33 = tpu.matmul %26, %7, %cst_26 {dimension_numbers = #tpu.dot_dimension_numbers<[2], [1], [1], [2], [0, 0, 0, 1, 1, 2], [0], [0]>} : vector<4x8x8xf32>, vector<4x8x32xf32>, vector<4x8x32xf32> -> vector<4x8x32xf32>
    %c0_27 = arith.constant 0 : index
    %c0_28 = arith.constant 0 : index
    %c0_29 = arith.constant 0 : index
    %34 = vector.load %arg12[%c0_27, %c0_28, %c0_29] : memref<4x8x32xf32, #tpu.memory_space<vmem>>, vector<4x8x32xf32>
    %35 = vector.broadcast %23 : vector<4x8x1xf32> to vector<4x8x32xf32>
    %36 = arith.mulf %35, %34 : vector<4x8x32xf32>
    %37 = arith.addf %36, %33 : vector<4x8x32xf32>
    %c0_30 = arith.constant 0 : index
    %c0_31 = arith.constant 0 : index
    %c0_32 = arith.constant 0 : index
    %38 = vector.load %arg12[%c0_30, %c0_31, %c0_32] : memref<4x8x32xf32, #tpu.memory_space<vmem>>, vector<4x8x32xf32>
    tpu.vector_store %arg12[%c0_30, %c0_31, %c0_32], %37 {strides = array<i32>} : memref<4x8x32xf32, #tpu.memory_space<vmem>>, vector<4x8x32xf32>,
    %c0_33 = arith.constant 0 : index
    %c0_34 = arith.constant 0 : index
    %c0_35 = arith.constant 0 : index
    %39 = vector.load %arg10[%c0_33, %c0_34, %c0_35] : memref<4x8x1xf32, #tpu.memory_space<vmem>>, vector<4x8x1xf32>
    tpu.vector_store %arg10[%c0_33, %c0_34, %c0_35], %21 {strides = array<i32>} : memref<4x8x1xf32, #tpu.memory_space<vmem>>, vector<4x8x1xf32>,
    %c0_i32_36 = arith.constant 0 : i32
    %40 = arith.cmpi eq, %arg3, %c0_i32_36 : i32
    %41 = arith.extui %40 : i1 to i32
    %c0_i32_37 = arith.constant 0 : i32
    %42 = arith.cmpi ne, %41, %c0_i32_37 : i32
    scf.if %42 {
      %c0_38 = arith.constant 0 : index
      %c0_39 = arith.constant 0 : index
      %c0_40 = arith.constant 0 : index
      %43 = vector.load %arg12[%c0_38, %c0_39, %c0_40] : memref<4x8x32xf32, #tpu.memory_space<vmem>>, vector<4x8x32xf32>
      %c0_41 = arith.constant 0 : index
      %c0_42 = arith.constant 0 : index
      %c0_43 = arith.constant 0 : index
      %44 = vector.load %arg11[%c0_41, %c0_42, %c0_43] : memref<4x8x1xf32, #tpu.memory_space<vmem>>, vector<4x8x1xf32>
      %45 = vector.broadcast %44 : vector<4x8x1xf32> to vector<4x8x32xf32>
      %46 = arith.divf %43, %45 : vector<4x8x32xf32>
      %c0_44 = arith.constant 0 : index
      %c0_45 = arith.constant 0 : index
      %c0_46 = arith.constant 0 : index
      %c0_47 = arith.constant 0 : index
      %47 = vector.load %arg8[%c0_44, %c0_45, %c0_46, %c0_47] : memref<1x4x8x32xf32, #tpu.memory_space<vmem>>, vector<1x4x8x32xf32>
      %48 = vector.shape_cast %47 : vector<1x4x8x32xf32> to vector<4x8x32xf32>
      %49 = vector.shape_cast %46 : vector<4x8x32xf32> to vector<1x4x8x32xf32>
      tpu.vector_store %arg8[%c0_44, %c0_45, %c0_46, %c0_47], %49 {strides = array<i32>} : memref<1x4x8x32xf32, #tpu.memory_space<vmem>>, vector<1x4x8x32xf32>,
    } else {
    }
    return
  }
  func.func @transform_0(%arg0: i32, %arg1: i32, %arg2: i32, %arg3: i32) -> (i32, i32, i32, i32) {
    %c0_i32 = arith.constant 0 : i32
    %c0_i32_0 = arith.constant 0 : i32
    return %arg0, %arg1, %arg2, %c0_i32 : i32, i32, i32, i32
  }
  func.func @transform_1(%arg0: i32, %arg1: i32, %arg2: i32, %arg3: i32) -> (i32, i32, i32, i32) {
    %c0_i32 = arith.constant 0 : i32
    %c0_i32_0 = arith.constant 0 : i32
    return %arg0, %arg1, %arg3, %c0_i32 : i32, i32, i32, i32
  }
  func.func @transform_2(%arg0: i32, %arg1: i32, %arg2: i32, %arg3: i32) -> (i32, i32, i32, i32) {
    %c0_i32 = arith.constant 0 : i32
    %c0_i32_0 = arith.constant 0 : i32
    return %arg0, %arg1, %arg3, %c0_i32 : i32, i32, i32, i32
  }
  func.func @transform_3(%arg0: i32, %arg1: i32, %arg2: i32, %arg3: i32) -> (i32, i32, i32) {
    %c0_i32 = arith.constant 0 : i32
    return %arg0, %arg2, %arg3 : i32, i32, i32
  }
  func.func @transform_4(%arg0: i32, %arg1: i32, %arg2: i32, %arg3: i32) -> (i32, i32, i32, i32) {
    %c0_i32 = arith.constant 0 : i32
    %c0_i32_0 = arith.constant 0 : i32
    return %arg0, %arg1, %arg2, %c0_i32 : i32, i32, i32, i32
  }
}

</mosaic_0001>

<bundles_post_ra>
// kernel: tpu_custom_call.1
= control target key start
LH: loop header
LB: loop body
LE: loop exit
PB: predicated region body
PF: predicated region fallthrough
CT: control target
= control target key end

     0   :  { %s1745_s0 = inlined_call_operand.hbm [shape: f32[2,4,8,32], index: 0, kind: input, shape index: {}]   ;;  %s1746_s1 = inlined_call_operand.hbm [shape: f32[2,4,8,32], index: 1, kind: input, shape index: {}]   ;;  %s1747_s2 = inlined_call_operand.hbm [shape: f32[2,4,8,32], index: 2, kind: input, shape index: {}]   ;;  %s1748_s3 = inlined_call_operand.hbm [shape: s8[2,8,8], index: 3, kind: input, shape index: {}]   ;;  %s1749_s4 = inlined_call_operand.hbm [shape: f32[2,4,8,32], index: 4, kind: output, shape index: {}]  }
   0x1   :  { %1756 = sst [smem:[#allocation25_spill]] %s1745_s0 }
   0x2   :  { %1757 = sst [smem:[#allocation26_spill]] %s1746_s1 }
   0x3   :  { %9 = vsyncpa [#allocation7], 0 }
   0x4   :  { %11 = vsyncpa [#allocation7 + $0x1], 0 }
   0x5   :  { %12 = vsyncpa [#allocation10], 0 }
   0x6   :  { %14 = vsyncpa [#allocation10 + $0x1], 0 }
   0x7   :  { %15 = vsyncpa [#allocation13], 0 }
   0x8   :  { %17 = vsyncpa [#allocation13 + $0x1], 0 }
   0x9   :  { %18 = vsyncpa [#allocation8], 0 }
   0xa   :  { %20 = vsyncpa [#allocation8 + $0x1], 0  ;;  %s1467_s15 = smov 0   ;;  %s1469_s16 = smov 0  }
   0xb   :  { %s1471_s17 = smov 0   ;;  %s1473_s18 = smov 0  }
   0xc   :  { %s1475_s19 = smov 0   ;;  %s1477_s20 = smov 0  }
   0xd LB: > { %1758 = sst [smem:[#allocation19_spill]] %s1413_s15  ;;  %s1498_s21 = sadd.s32 4294967295, %s1433_s20   ;;  %s1433_s20 = sphi %s1477_s20, %s26_s20   ;;  %s1429_s19 = sphi %s1475_s19, %s1781_s19   ;;  %s1425_s18 = sphi %s1473_s18, %s1780_s18   ;;  %s1421_s17 = sphi %s1471_s17, %s1776_s17   ;;  %s1417_s16 = sphi %s1469_s16, %s1779_s16   ;;  %s1413_s15 = sphi %s1467_s15, %s1778_s15  }
   0xe   : > { %1759 = sst [smem:[#allocation20_spill]] %s1421_s17  ;;  %s1071_s22 = sadd.s32 4294967294, %s1433_s20  }
   0xf   : > { %1760 = sst [smem:[#allocation21_spill]] %s1433_s20  ;;  %s52_s23 = sadd.s32 1, %s1429_s19 }
  0x10   : > { %s63_s24 = sadd.s32 1, %s1421_s17  ;;  %p54_p0 = scmp.ge.s32.totalorder %s52_s23, 2 }
  0x11   : > { %p70_p1 = scmp.ne.s32.totalorder %s1421_s17, %s1417_s16  ;;  %p71_p2 = scmp.eq.s32.totalorder %s1433_s20, 0 }
  0x12   : > { %p76_p3 = scmp.ne.s32.totalorder %s1417_s16, %s1413_s15  ;;  %s1783_s23 = smov (%p54_p0, %s52_s23), 0 }
  0x13   : > { %1761 = sst [smem:[#allocation22_spill]] %s1783_s23  ;;  %p1510_p4 = por %p71_p2, %p70_p1 }
  0x14   : > { %p77_p5 = scmp.eq.s32.totalorder %s1498_s21, 0  ;;  %s56_s26 = ssub.s32 %s1429_s19, %s1783_s23 }
  0x15   : > { %p194_p6 = scmp.eq.s32.totalorder %s1498_s21, 1  ;;  %p61_p7 = scmp.eq.s32.totalorder %s56_s26, 0 }
  0x16   : > { %p1518_p8 = por %p77_p5, %p76_p3  ;;  %p200_p10 = scmp.eq.s32.totalorder %s1071_s22, 1 }
  0x17   : > { %p1522_p9 = por %p194_p6, %p70_p1  ;;  %p1073_p12 = scmp.ge.s32.totalorder %s1433_s20, 2 }
  0x18   : > { %s1527_s29 = scalar_select %p61_p7, %s1421_s17, %s63_s24  }
  0x19   : > { %p1529_p11 = por %p200_p10, %p76_p3  ;;  %p1139_p13 = scmp.lt.s32.totalorder %s1433_s20, 2 }
  0x1a   : > { %1765 = sst [smem:[#allocation23_spill]] %s1527_s29  ;;  %s1536_s5 = sand.u32 1, %s1421_s17  }
  0x1b   : > { %s1766_s30 = scalar_select %p1529_p11, 1, 0 }
  0x1c   : > { %s1539_s6 = sshll.u32 %s1536_s5, 5  ;;  %s1108_s7 = sshll.u32 %s1429_s19, 5 }
  0x1d   : > { %1767 = sst [smem:[#allocation24_spill]] %s1766_s30  ;;  %p1544_p0 = pnand %p1139_p13, %p1510_p4 }
  0x1e   : > { %s245_s9 = sand.u32 1, %s1433_s20   ;;  %s1769_s1 = sld [smem:[#allocation26_spill]] }
  0x1f   : > { %s249_s14 = scalar_lea.vmem [#allocation9], %s1539_s6  ;;  %s246_s24 = scalar_lea.sflag [#allocation10], %s245_s9 }
  0x20   : > { %s260_s22 = sshll.u32 %s249_s14, 4  ;;  %s1435_s25 = smov 128   ;;  %s261_s22 = int_to_ptr.vmem [resolvable:$true] %s260_s22 }
  0x21   : > { %s1436_s26 = smov 8   ;;  %p1085_p1 = scmp.ge.s32.totalorder %s1433_s20, 1 }
  0x22   : > { %p314_p2 = scmp.lt.s32.totalorder %s1433_s20, 3  ;;  %s1771_s0 = sld [smem:[#allocation25_spill]] }
  0x23   : > { %s224_s9 = scalar_lea.vmem [#allocation6], %s1539_s6  ;;  %s221_s29 = scalar_lea.sflag [#allocation7], %s1536_s5 }
  0x24   : > { %s257_s12 = scalar_lea.hbm %s1769_s1, %s1108_s7  ;;  %p1557_p3 = pnand %p1085_p1, %p314_p2 }
  0x25   : > { %s258_s13 = sshll.u32 %s257_s12, 4  ;;  %s235_s23 = sshll.u32 %s224_s9, 4  ;;  %s259_s13 = int_to_ptr.hbm [resolvable:$true] %s258_s13  ;;  %s236_s23 = int_to_ptr.vmem [resolvable:$true] %s235_s23 }
  0x26   : > { %1128 = dma.hbm_to_vmem [thread:$0]  (!%p1544_p0), %s259_s13, 512, %s261_s22, %s246_s24, %s1435_s25, %s1435_s25, %s1436_s26  }
  0x27   : > { %s282_s17 = scalar_lea.hbm %s1747_s2, %s1108_s7  ;;  %s274_s30 = scalar_lea.vmem [#allocation11], %s1539_s6 }
  0x28   : > { %s232_s14 = scalar_lea.hbm %s1771_s0, %s1108_s7  ;;  %s283_s20 = sshll.u32 %s282_s17, 4  ;;  %s284_s20 = int_to_ptr.hbm [resolvable:$true] %s283_s20 }
  0x29   : > { %s233_s1 = sshll.u32 %s232_s14, 4  ;;  %s285_s11 = sshll.u32 %s274_s30, 4  ;;  %s234_s1 = int_to_ptr.hbm [resolvable:$true] %s233_s1  ;;  %s286_s11 = int_to_ptr.vmem [resolvable:$true] %s285_s11 }
  0x2a   : > { %1125 = dma.hbm_to_vmem [thread:$0]  (!%p1544_p0), %s234_s1, 512, %s236_s23, %s221_s29, %s1435_s25, %s1435_s25, %s1436_s26  }
  0x2b   : > { %1131 = dma.hbm_to_vmem [thread:$0]  (!%p1544_p0), %s284_s20, 512, %s286_s11, %s246_s24, %s1435_s25, %s1435_s25, %s1436_s26  }
  0x2c   : > { %s1083_s12 = sshll.u32 %s1536_s5, 1  ;;  %s1084_s14 = sshll.u32 %s1429_s19, 1 }
  0x2d   : > { %s305_s15 = scalar_lea.hbm %s1748_s3, %s1084_s14  ;;  %s299_s1 = scalar_lea.vmem [#allocation12], %s1083_s12 }
  0x2e   : > { %s309_s23 = sshll.u32 %s299_s1, 4  ;;  %s307_s29 = sshll.u32 %s305_s15, 4  ;;  %s310_s23 = int_to_ptr.vmem [resolvable:$true] %s309_s23  ;;  %s308_s29 = int_to_ptr.hbm [resolvable:$true] %s307_s29 }
  0x2f   : > { %s296_s7 = scalar_lea.sflag [#allocation13], %s1536_s5  ;;  %318 = sbr.rel (%p1557_p3) target bundleno = 752 (0x2f0), region = 36 }
  0x30   : > { %1134 = dma.hbm_to_vmem [thread:$0]  (!%p1544_p0), %s308_s29, 32, %s310_s23, %s296_s7  }
  0x31   : > { %s1585_s17 = sand.u32 (!%p1557_p3), 1, %s1417_s16  }
  0x32   : > { %s1588_s20 = sshll.u32 (!%p1557_p3), %s1585_s17, 5  ;;  %s321_s0 = scalar_lea.sflag (!%p1557_p3), [#allocation7], %s1585_s17 }
  0x33   : > { %s324_s30 = scalar_lea.vmem (!%p1557_p3), [#allocation6], %s1588_s20 }
  0x34   : > { %1396 = dma.done.wait (%p1518_p8), %s321_s0, 512  }
  0x35   : > { %1398 = vsyncadd (%p1518_p8), %s321_s0, 4294966784  ;;  %s330_s15 = sand.u32 1, %s1498_s21   ;;  %s334_s6 = scalar_lea.vmem [#allocation9], %s1588_s20 }
  0x36   : > { %s331_s5 = scalar_lea.sflag [#allocation10], %s330_s15 }
  0x37   : > { %1400 = dma.done.wait (%p1518_p8), %s331_s5, 1024  }
  0x38   : > { %1402 = vsyncadd (%p1518_p8), %s331_s5, 4294966272  ;;  %s1089_s8 = sshll.u32 %s1585_s17, 1  ;;  %s1604_s24 = scalar_lea.vmem [#allocation11], %s1588_s20 }
  0x39   : > { %s351_s25 = scalar_lea.sflag [#allocation13], %s1585_s17  ;;  %s1607_s26 = scalar_lea.vmem [#allocation12], %s1089_s8 }
  0x3a   : > { %1404 = dma.done.wait (%p1518_p8), %s351_s25, 32  }
  0x3b   : > { %1406 = vsyncadd (%p1518_p8), %s351_s25, 4294967264  ;;  %vm413_vm0 = vcmask 261120   ;;  %v435_v0 = vld [vmem:[%s334_s6] sm:$0xff]  ;;  %v437_v1 = vld [vmem:[%s334_s6 + $0x10] sm:$0xff]  ;;  %v1437_v16 = vmov 0   ;;  %vm418_vm1 = vcmask 7168  }
  0x3c   : > { %v405_v2 = vld [vmem:[%s324_s30] sm:$0xff]  ;;  %1091 = vmatpush.xpose.msk.msra.mxu0 %vm413_vm0, %v435_v0  ;;  %1095 = vmatpush.xpose.msk.msra.mxu2 %vm413_vm0, %v437_v1  ;;  %v407_v4 = vld [vmem:[%s324_s30 + $0x10] sm:$0xff]  ;;  %v436_v5 = vld [vmem:[%s334_s6 + $0x8] sm:$0xff]  ;;  %v1438_v18 = vmov -1e+30   ;;  %vm563_vm4 = vcmask 64512  }
  0x3d   : > { %v409_v3 = vmul.f32 0.17677669, %v405_v2  ;;  %v438_v6 = vld [vmem:[%s334_s6 + $0x18] sm:$0xff]  ;;  %v411_v7 = vmul.f32 0.17677669, %v407_v4  ;;  %1093 = vmatpush.xpose.msk.msra.mxu1 %vm413_vm0, %v436_v5  ;;  %v406_v8 = vld [vmem:[%s324_s30 + $0x8] sm:$0xff]  ;;  %1196 = vset.pattern.permute.xlu0 %v1437_v16 }
  0x3e   : > { %1097 = vmatpush.xpose.msk.msra.mxu3 %vm413_vm0, %v438_v6  ;;  %v408_v9 = vld [vmem:[%s324_s30 + $0x18] sm:$0xff]  ;;  %v410_v10 = vmul.f32 0.17677669, %v406_v8  ;;  %1198 = vset.pattern.permute.xlu2 %v1437_v16  ;;  %v548_v17 = vld [vmem:[%s1607_s26] sm:$0x3]  ;;  %419 = vst.msk [vmem:[#allocation3] sm:$0xff] %vm418_vm1, %v1438_v18 }
  0x3f   : > { %414 = vst.msk [vmem:[#allocation2] sm:$0xff] %vm413_vm0, %v409_v3  ;;  %v412_v11 = vmul.f32 0.17677669, %v408_v9  ;;  %1197 = vset.pattern.permute.xlu1 %v1437_v16  ;;  %vm549_vm2 = vnez %v548_v17  ;;  %v1439_v33 = vmov 0.0   ;;  %v441_v50 = vld [vmem:[%s1604_s24 + $0x10] sm:$0xff]  ;;  %v442_v51 = vld [vmem:[%s1604_s24 + $0x18] sm:$0xff] }
  0x40   : > { %416 = vst.msk [vmem:[#allocation2 + $0x10] sm:$0xff] %vm413_vm0, %v411_v7  ;;  %v550_v19 = vsel %vm549_vm2, 16843009, %v1437_v16  ;;  %717 = vmatpush.msrb.mxu2 %v441_v50  ;;  %v439_v52 = vld [vmem:[%s1604_s24] sm:$0xff]  ;;  %v440_v55 = vld [vmem:[%s1604_s24 + $0x8] sm:$0xff]  ;;  %s1694_s21 = scalar_lea.vmem [#allocation14], %s1588_s20 }
  0x41   : > { %415 = vst.msk [vmem:[#allocation2 + $0x8] sm:$0xff] %vm413_vm0, %v410_v10  ;;  %v551_v20 = vunpack.c.0.s8 %v550_v19  ;;  %671 = vmatpush.msrb.mxu0 %v439_v52  ;;  %694 = vmatpush.msrb.mxu1 %v440_v55  ;;  %s1111_s27 = sshll.u32 %s1425_s18, 5  ;;  %s896_s11 = sshll.u32 %s1694_s21, 4  ;;  %s897_s11 = int_to_ptr.vmem [resolvable:$true] %s896_s11 }
  0x42   : > { %417 = vst.msk [vmem:[#allocation2 + $0x18] sm:$0xff] %vm413_vm0, %v412_v11  ;;  %740 = vmatpush.msrb.mxu3 %v442_v51  ;;  %s895_s22 = scalar_lea.hbm %s1749_s4, %s1111_s27  ;;  %s881_s18 = scalar_lea.sflag [#allocation8], %s1585_s17 }
  0x43   : > { %420 = vst.msk [vmem:[#allocation3 + $0x8] sm:$0xff] %vm418_vm1, %v1438_v18  ;;  %vm552_vm3 = vcmp.ne.s32.totalorder %v551_v20, 0  ;;  %s898_s12 = sshll.u32 %s895_s22, 4  ;;  %s1363_s29 = scalar_lea.hbm %s1749_s4, 64  ;;  %s899_s12 = int_to_ptr.hbm [resolvable:$true] %s898_s12 }
  0x44   : > { %421 = vst.msk [vmem:[#allocation3 + $0x10] sm:$0xff] %vm418_vm1, %v1438_v18  ;;  %s1357_s14 = sshra.s32 %s899_s12, 4  ;;  %s1358_s14 = int_to_ptr.hbm [resolvable:$true] %s1357_s14 }
  0x45   : > { %422 = vst.msk [vmem:[#allocation3 + $0x18] sm:$0xff] %vm418_vm1, %v1438_v18  ;;  %v559_v34 = vld [vmem:[#allocation3] sm:$0xff]  ;;  %s1359_s9 = scalar_lea.hbm %s1358_s14, 32  ;;  %p1364_p7 = scmp.lt.s32.totalorder %s1358_s14, %s1749_s4 }
  0x46   : > { %v431_v12 = vld [vmem:[#allocation2] sm:$0xff]  ;;  %425 = vst.msk [vmem:[#allocation4 + $0x10] sm:$0xff] %vm418_vm1, %v1439_v33  ;;  %p1360_p4 = scmp.ne.s32.totalorder %s1358_s14, %s1359_s9  ;;  %p1365_p8 = scmp.lt.s32.totalorder %s1363_s29, %s1359_s9 }
  0x47   : > { %1092 = vmatmul.msk.f32.vlgmr.msra.gmra.mxu0 %vm413_vm0, %v431_v12  ;;  %v433_v13 = vld [vmem:[#allocation2 + $0x10] sm:$0xff]  ;;  %423 = vst.msk [vmem:[#allocation4] sm:$0xff] %vm418_vm1, %v1439_v33 }
  0x48   : > { %1096 = vmatmul.msk.f32.vlgmr.msra.gmra.mxu2 %vm413_vm0, %v433_v13  ;;  %v432_v14 = vld [vmem:[#allocation2 + $0x8] sm:$0xff]  ;;  %424 = vst.msk [vmem:[#allocation4 + $0x8] sm:$0xff] %vm418_vm1, %v1439_v33  ;;  %p1361_p5 = pnand %p1360_p4, %p1522_p9  ;;  %p1366_p10 = por %p1365_p8, %p1364_p7 }
  0x49   : > { %1094 = vmatmul.msk.f32.vlgmr.msra.gmra.mxu1 %vm413_vm0, %v432_v14  ;;  %v434_v15 = vld [vmem:[#allocation2 + $0x18] sm:$0xff]  ;;  %426 = vst.msk [vmem:[#allocation4 + $0x18] sm:$0xff] %vm418_vm1, %v1439_v33 }
  0x4a   : > { %1098 = vmatmul.msk.f32.vlgmr.msra.gmra.mxu3 %vm413_vm0, %v434_v15  ;;  %427 = vst.msk [vmem:[#allocation5] sm:$0xff] %vm413_vm0, %v1439_v33  ;;  %v560_v39 = vld [vmem:[#allocation3 + $0x8] sm:$0xff]  ;;  %p1362_p6 = pneg %p1361_p5 }
  0x4b   : > { %428 = vst.msk [vmem:[#allocation5 + $0x8] sm:$0xff] %vm413_vm0, %v1439_v33  ;;  %v1649_v38 = vld [vmem:[#allocation3 + $0x10] sm:$0xff] }
  0x4c   : > { %429 = vst.msk [vmem:[#allocation5 + $0x10] sm:$0xff] %vm413_vm0, %v1439_v33  ;;  %v1660_v46 = vld [vmem:[#allocation3 + $0x18] sm:$0xff]  ;;  %p1367_p13 = pnand %p1366_p10, %p1362_p6 }
  0x4d   : > { %430 = vst.msk [vmem:[#allocation5 + $0x18] sm:$0xff] %vm413_vm0, %v1439_v33  ;;  %v626_v16 = vld [vmem:[#allocation4 + $0x10] sm:$0xff] }
  0x4e   : > { %v624_v20 = vld [vmem:[#allocation4] sm:$0xff] }
  0xc4   : > { %v467_v21 = vpop.f32.mrf.mxu0 }
  0xc5   : > { %v1630_v22 = vsel %vm552_vm3, %v467_v21, -1e+09 }
  0xc6   : > { %v564_v23 = vsel %vm563_vm4, %v1630_v22, -inf  ;;  %v493_v24 = vpop.f32.mrf.mxu1 }
  0xc7   : > { %565 = vmax.xlane.f32.xlu1 %v564_v23  ;;  %v1634_v25 = vsel %vm552_vm3, %v493_v24, -1e+09  ;;  %v625_v24 = vld [vmem:[#allocation4 + $0x8] sm:$0xff] }
  0xc8   : > { %v567_v28 = vsel %vm563_vm4, %v1634_v25, -inf }
  0xcb   : > { %v519_v26 = vpop.f32.mrf.mxu2 }
  0xcc   : > { %v557_v27 = vsel %vm552_vm3, %v519_v26, -1e+09 }
  0xcd   : > { %v570_v29 = vsel %vm563_vm4, %v557_v27, -inf  ;;  %v545_v30 = vpop.f32.mrf.mxu3 }
  0xce   : > { %571 = vmax.xlane.f32.xlu0 %v570_v29  ;;  %v558_v31 = vsel %vm552_vm3, %v545_v30, -1e+09 }
  0xcf   : > { %568 = vmax.xlane.f32.xlu1 %v567_v28  ;;  %v573_v32 = vsel %vm563_vm4, %v558_v31, -inf }
  0xd6   : > { %574 = vmax.xlane.f32.xlu0 %v573_v32 }
 0x13a   : > { %v566_v35 = vpop.xlane.xlu1 %565 }
 0x13b   : > { %v576_v36 = vmax.f32 %v559_v34, %v566_v35 }
 0x13d   : > { %v580_v37 = vsub.f32 %v559_v34, %v576_v36  ;;  %781 = vst.msk [vmem:[#allocation3] sm:$0xff] %vm418_vm1, %v576_v36  ;;  %594 = vperm.xlu0 %1196, %v576_v36   ;;  %v746_v34 = vld [vmem:[#allocation5 + $0x8] sm:$0xff] }
 0x13f   : > { %v584_v2 = vmul.f32 1.442695, %v580_v37 }
 0x141   : > { %v572_v40 = vpop.xlane.xlu0 %571 }
 0x142   : > { %v1652_v41 = vmax.f32 %v1649_v38, %v572_v40  ;;  %v569_v42 = vpop.xlane.xlu1 %568 }
 0x143   : > { %v577_v43 = vmax.f32 %v560_v39, %v569_v42 }
 0x144   : > { %v582_v44 = vsub.f32 %v1649_v38, %v1652_v41  ;;  %783 = vst.msk [vmem:[#allocation3 + $0x10] sm:$0xff] %vm418_vm1, %v1652_v41  ;;  %604 = vperm.xlu2 %1198, %v1652_v41  }
 0x145   : > { %v581_v45 = vsub.f32 %v560_v39, %v577_v43  ;;  %782 = vst.msk [vmem:[#allocation3 + $0x8] sm:$0xff] %vm418_vm1, %v577_v43  ;;  %599 = vperm.xlu1 %1197, %v577_v43   ;;  %v627_v43 = vld [vmem:[#allocation4 + $0x18] sm:$0xff] }
 0x146   : > { %v588_v14 = vmul.f32 1.442695, %v582_v44 }
 0x147   : > { %v586_v11 = vmul.f32 1.442695, %v581_v45 }
 0x149   : > { %v575_v47 = vpop.xlane.xlu0 %574 }
 0x14a   : > { %v1663_v48 = vmax.f32 %v1660_v46, %v575_v47 }
 0x14c   : > { %v583_v49 = vsub.f32 %v1660_v46, %v1663_v48  ;;  %784 = vst.msk [vmem:[#allocation3 + $0x18] sm:$0xff] %vm418_vm1, %v1663_v48  ;;  %609 = vperm.xlu2 %1198, %v1663_v48  }
 0x14e   : > { %v590_v41 = vmul.f32 1.442695, %v583_v49 }
 0x19e   : > { %v605_v53 = vpop.permute.xlu2 %604 }
 0x19f   : > { %v614_v54 = vsub.f32 %v557_v27, %v605_v53 }
 0x1a1   : > { %v620_v56 = vmul.f32 1.442695, %v614_v54 }
 0x1a3   : > { %1199 = vpow2.f32 %v620_v56 }
 0x1a6   : > { %v610_v57 = vpop.permute.xlu2 %609 }
 0x1a7   : > { %v615_v58 = vsub.f32 %v558_v31, %v610_v57 }
 0x1a9   : > { %v1200_v59 = vpop.eup %1199  ;;  %v622_v60 = vmul.f32 1.442695, %v615_v58 }
 0x1aa   : > { %1101 = vmatmul.msk.f32.vlgmr.msrb.gmra.mxu2 %vm563_vm4, %v1200_v59  ;;  %v638_v61 = vsel %vm563_vm4, %v1200_v59, 0.0 }
 0x1ab   : > { %1201 = vpow2.f32 %v622_v60  ;;  %639 = vadd.xlane.f32.xlu0 %v638_v61 }
 0x1af   : > { %v595_v62 = vpop.permute.xlu0 %594 }
 0x1b0   : > { %v612_v63 = vsub.f32 %v1630_v22, %v595_v62 }
 0x1b1   : > { %v1202_v0 = vpop.eup %1201 }
 0x1b2   : > { %v616_v1 = vmul.f32 1.442695, %v612_v63  ;;  %1102 = vmatmul.msk.f32.vlgmr.msrb.gmra.mxu3 %vm563_vm4, %v1202_v0  ;;  %v641_v13 = vsel %vm563_vm4, %v1202_v0, 0.0 }
 0x1b4   : > { %1203 = vpow2.f32 %v616_v1 }
 0x1b5   : > { %1205 = vpow2.f32 %v584_v2  ;;  %v747_v2 = vld [vmem:[#allocation5 + $0x10] sm:$0xff] }
 0x1b7   : > { %v600_v3 = vpop.permute.xlu1 %599 }
 0x1b8   : > { %v613_v4 = vsub.f32 %v1634_v25, %v600_v3  ;;  %v745_v25 = vld [vmem:[#allocation5] sm:$0xff] }
 0x1ba   : > { %v1204_v5 = vpop.eup %1203  ;;  %v618_v6 = vmul.f32 1.442695, %v613_v4 }
 0x1bb   : > { %1099 = vmatmul.msk.f32.vlgmr.msrb.gmra.mxu0 %vm563_vm4, %v1204_v5  ;;  %v632_v7 = vsel %vm563_vm4, %v1204_v5, 0.0  ;;  %v1206_v8 = vpop.eup %1205 }
 0x1bc   : > { %1207 = vpow2.f32 %v618_v6  ;;  %633 = vadd.xlane.f32.xlu2 %v632_v7  ;;  %v628_v21 = vmul.f32 %v1206_v8, %v624_v20 }
 0x1bd   : > { %1209 = vpow2.f32 %v586_v11 }
 0x1be   : > { %1211 = vpow2.f32 %v588_v14 }
 0x1bf   : > { %751 = vperm.xlu0 %1196, %v1206_v8   ;;  %1213 = vpow2.f32 %v590_v41 }
 0x1c2   : > { %v1208_v9 = vpop.eup %1207 }
 0x1c3   : > { %1100 = vmatmul.msk.f32.vlgmr.msrb.gmra.mxu1 %vm563_vm4, %v1208_v9  ;;  %v635_v10 = vsel %vm563_vm4, %v1208_v9, 0.0  ;;  %v1210_v12 = vpop.eup %1209 }
 0x1c4   : > { %636 = vadd.xlane.f32.xlu1 %v635_v10  ;;  %v1212_v15 = vpop.eup %1211  ;;  %v629_v27 = vmul.f32 %v1210_v12, %v625_v24 }
 0x1c5   : > { %v630_v17 = vmul.f32 %v1212_v15, %v626_v16  ;;  %v1214_v42 = vpop.eup %1213 }
 0x1c6   : > { %v631_v44 = vmul.f32 %v1214_v42, %v627_v43 }
 0x1d4   : > { %756 = vperm.xlu2 %1198, %v1210_v12  }
 0x1fd   : > { %642 = vadd.xlane.f32.xlu2 %v641_v13 }
 0x21e   : > { %v640_v18 = vpop.xlane.xlu0 %639 }
 0x21f   : > { %v646_v19 = vadd.f32 %v640_v18, %v630_v17 }
 0x221   : > { %651 = vst.msk [vmem:[#allocation4 + $0x10] sm:$0xff] %vm418_vm1, %v646_v19 }
 0x228   : > { %v794_v39 = vld [vmem:[#allocation4 + $0x10] sm:$0xff] }
 0x22d   : > { %v719_v8 = vpop.f32.mrf.mxu2 }
 0x22f   : > { %v634_v22 = vpop.xlane.xlu2 %633 }
 0x230   : > { %v644_v23 = vadd.f32 %v634_v22, %v628_v21 }
 0x231   : > { %v752_v26 = vpop.permute.xlu0 %751 }
 0x232   : > { %649 = vst.msk [vmem:[#allocation4] sm:$0xff] %vm418_vm1, %v644_v23  ;;  %v769_v28 = vmul.f32 %v752_v26, %v745_v25 }
 0x237   : > { %v637_v29 = vpop.xlane.xlu1 %636  ;;  %v757_v35 = vpop.permute.xlu2 %756 }
 0x238   : > { %v645_v30 = vadd.f32 %v637_v29, %v629_v27  ;;  %v673_v31 = vpop.f32.mrf.mxu0  ;;  %v770_v36 = vmul.f32 %v757_v35, %v746_v34  ;;  %v748_v29 = vld [vmem:[#allocation5 + $0x18] sm:$0xff]  ;;  %v742_v34 = vpop.f32.mrf.mxu3 }
 0x239   : > { %v773_v32 = vadd.f32 %v769_v28, %v673_v31  ;;  %v792_v33 = vld [vmem:[#allocation4] sm:$0xff] }
 0x23a   : > { %650 = vst.msk [vmem:[#allocation4 + $0x8] sm:$0xff] %vm418_vm1, %v645_v30  ;;  %798 = vperm.xlu2 %1198, %v792_v33  }
 0x23b   : > { %777 = vst.msk [vmem:[#allocation5] sm:$0xff] %vm413_vm0, %v773_v32 }
 0x240   : > { %v696_v37 = vpop.f32.mrf.mxu1 }
 0x241   : > { %v774_v38 = vadd.f32 %v770_v36, %v696_v37  ;;  %v793_v40 = vld [vmem:[#allocation4 + $0x8] sm:$0xff] }
 0x242   : > { %808 = vperm.xlu2 %1198, %v794_v39   ;;  %803 = vperm.xlu1 %1197, %v793_v40   ;;  %v788_v58 = vld [vmem:[#allocation5] sm:$0xff] }
 0x243   : > { %778 = vst.msk [vmem:[#allocation5 + $0x8] sm:$0xff] %vm413_vm0, %v774_v38 }
 0x24a   : > { %761 = vperm.xlu1 %1197, %v1212_v15   ;;  %v789_v21 = vld [vmem:[#allocation5 + $0x8] sm:$0xff] }
 0x270   : > { %v643_v45 = vpop.xlane.xlu2 %642 }
 0x271   : > { %v647_v47 = vadd.f32 %v643_v45, %v631_v44 }
 0x273   : > { %652 = vst.msk [vmem:[#allocation4 + $0x18] sm:$0xff] %vm418_vm1, %v647_v47 }
 0x27a   : > { %v795_v50 = vld [vmem:[#allocation4 + $0x18] sm:$0xff] }
 0x27b   : > { %813 = vperm.xlu2 %1198, %v795_v50  }
 0x283   : > { %766 = vperm.xlu2 %1198, %v1214_v42  }
 0x294   : > { %v799_v51 = vpop.permute.xlu2 %798 }
 0x295   : > { %1215 = vrcp.f32 %v799_v51  ;;  %v827_v55 = vand.u32 2147483648, %v799_v51  ;;  %v825_v48 = vand.u32 2147483647, %v799_v51  ;;  %vm821_vm6 = vweird.f32 %v799_v51 }
 0x297   : > { %v828_v56 = vor.u32 1.1754944e-38, %v827_v55  ;;  %vm826_vm8 = vcmp.eq.f32.partialorder %v825_v48, 8.507059e+37 }
 0x29b   : > { %v1216_v52 = vpop.eup %1215 }
 0x29c   : > { %v817_v53 = vmul.f32 %v1216_v52, %v799_v51  ;;  %vm822_vm5 = vweird.f32 %v1216_v52  ;;  %v809_v61 = vpop.permute.xlu2 %808 }
 0x29d   : > { %vm823_vm7 = vmor %vm821_vm6, %vm822_vm5  ;;  %1217 = vrcp.f32 %v809_v61  ;;  %v857_v15 = vand.u32 2147483648, %v809_v61  ;;  %vm851_vm12 = vweird.f32 %v809_v61  ;;  %v855_v17 = vand.u32 2147483647, %v809_v61 }
 0x29e   : > { %v818_v54 = vsub.f32 1.0, %v817_v53 }
 0x29f   : > { %v858_v23 = vor.u32 1.1754944e-38, %v857_v15  ;;  %vm856_vm1 = vcmp.eq.f32.partialorder %v855_v17, 8.507059e+37 }
 0x2a0   : > { %v819_v46 = vmul.f32 %v1216_v52, %v818_v54 }
 0x2a2   : > { %v820_v49 = vadd.f32 %v1216_v52, %v819_v46 }
 0x2a3   : > { %v1218_v62 = vpop.eup %1217 }
 0x2a4   : > { %v824_v57 = vsel %vm823_vm7, %v1216_v52, %v820_v49  ;;  %v847_v0 = vmul.f32 %v1218_v62, %v809_v61  ;;  %vm852_vm10 = vweird.f32 %v1218_v62 }
 0x2a5   : > { %v829_v59 = vsel %vm826_vm8, %v828_v56, %v824_v57  ;;  %vm853_vm14 = vmor %vm851_vm12, %vm852_vm10 }
 0x2a6   : > { %v830_v60 = vmul.f32 %v829_v59, %v788_v58  ;;  %v848_v1 = vsub.f32 1.0, %v847_v0 }
 0x2a8   : > { %876 = vst.msk [vmem:[%s1694_s21] sm:$0xff] %vm413_vm0, %v830_v60  ;;  %v849_v6 = vmul.f32 %v1218_v62, %v848_v1 }
 0x2aa   : > { %v850_v14 = vadd.f32 %v1218_v62, %v849_v6 }
 0x2ac   : > { %v854_v20 = vsel %vm853_vm14, %v1218_v62, %v850_v14 }
 0x2ad   : > { %v859_v25 = vsel %vm856_vm1, %v858_v23, %v854_v20 }
 0x2b4   : > { %v804_v63 = vpop.permute.xlu1 %803 }
 0x2b5   : > { %1219 = vrcp.f32 %v804_v63  ;;  %v842_v10 = vand.u32 2147483648, %v804_v63  ;;  %v840_v13 = vand.u32 2147483647, %v804_v63  ;;  %vm836_vm11 = vweird.f32 %v804_v63 }
 0x2b7   : > { %v843_v18 = vor.u32 1.1754944e-38, %v842_v10  ;;  %vm841_vm15 = vcmp.eq.f32.partialorder %v840_v13, 8.507059e+37 }
 0x2bb   : > { %v1220_v3 = vpop.eup %1219 }
 0x2bc   : > { %v832_v4 = vmul.f32 %v1220_v3, %v804_v63  ;;  %v762_v5 = vpop.permute.xlu1 %761  ;;  %vm837_vm9 = vweird.f32 %v1220_v3 }
 0x2bd   : > { %v771_v7 = vmul.f32 %v762_v5, %v747_v2  ;;  %vm838_vm13 = vmor %vm836_vm11, %vm837_vm9 }
 0x2be   : > { %v833_v9 = vsub.f32 1.0, %v832_v4 }
 0x2bf   : > { %v775_v11 = vadd.f32 %v771_v7, %v719_v8 }
 0x2c0   : > { %v834_v12 = vmul.f32 %v1220_v3, %v833_v9 }
 0x2c1   : > { %779 = vst.msk [vmem:[#allocation5 + $0x10] sm:$0xff] %vm413_vm0, %v775_v11 }
 0x2c2   : > { %v835_v16 = vadd.f32 %v1220_v3, %v834_v12 }
 0x2c4   : > { %v839_v19 = vsel %vm838_vm13, %v1220_v3, %v835_v16 }
 0x2c5   : > { %v844_v22 = vsel %vm841_vm15, %v843_v18, %v839_v19 }
 0x2c6   : > { %v845_v24 = vmul.f32 %v844_v22, %v789_v21 }
 0x2c8   : > { %877 = vst.msk [vmem:[%s1694_s21 + $0x8] sm:$0xff] %vm413_vm0, %v845_v24  ;;  %v790_v26 = vld [vmem:[#allocation5 + $0x10] sm:$0xff] }
 0x2c9   : > { %v860_v27 = vmul.f32 %v859_v25, %v790_v26 }
 0x2cb   : > { %878 = vst.msk [vmem:[%s1694_s21 + $0x10] sm:$0xff] %vm413_vm0, %v860_v27 }
 0x2d5   : > { %v814_v28 = vpop.permute.xlu2 %813 }
 0x2d6   : > { %1221 = vrcp.f32 %v814_v28  ;;  %v872_v39 = vand.u32 2147483648, %v814_v28  ;;  %vm866_vm3 = vweird.f32 %v814_v28  ;;  %v870_v40 = vand.u32 2147483647, %v814_v28 }
 0x2d8   : > { %v873_v42 = vor.u32 1.1754944e-38, %v872_v39  ;;  %vm871_vm5 = vcmp.eq.f32.partialorder %v870_v40, 8.507059e+37 }
 0x2dc   : > { %v1222_v30 = vpop.eup %1221 }
 0x2dd   : > { %v862_v31 = vmul.f32 %v1222_v30, %v814_v28  ;;  %v767_v32 = vpop.permute.xlu2 %766  ;;  %vm867_vm2 = vweird.f32 %v1222_v30 }
 0x2de   : > { %v772_v33 = vmul.f32 %v767_v32, %v748_v29  ;;  %vm868_vm4 = vmor %vm866_vm3, %vm867_vm2 }
 0x2df   : > { %v863_v35 = vsub.f32 1.0, %v862_v31 }
 0x2e0   : > { %v776_v36 = vadd.f32 %v772_v33, %v742_v34 }
 0x2e1   : > { %v864_v37 = vmul.f32 %v1222_v30, %v863_v35 }
 0x2e2   : > { %780 = vst.msk [vmem:[#allocation5 + $0x18] sm:$0xff] %vm413_vm0, %v776_v36 }
 0x2e3   : > { %v865_v38 = vadd.f32 %v1222_v30, %v864_v37 }
 0x2e5   : > { %v869_v41 = vsel %vm868_vm4, %v1222_v30, %v865_v38 }
 0x2e6   : > { %v874_v43 = vsel %vm871_vm5, %v873_v42, %v869_v41 }
 0x2e9   : > { %v791_v44 = vld [vmem:[#allocation5 + $0x18] sm:$0xff] }
 0x2ea   : > { %v875_v45 = vmul.f32 %v874_v43, %v791_v44 }
 0x2ec   : > { %879 = vst.msk [vmem:[%s1694_s21 + $0x18] sm:$0xff] %vm413_vm0, %v875_v45 }
 0x2ed   : > { %1370 = shalt.err (!%p1367_p13)
}
 0x2ee   : > { %s1440_s17 = smov 128   ;;  %s1441_s0 = smov 8  }
 0x2ef   : > { %1120 = dma.vmem_to_hbm [thread:$0]  (%p1522_p9), %s897_s11, 512, %s899_s12, %s881_s18, %s1440_s17, %s1440_s17, %s1441_s0  }
 0x2f0 PF: > { %s1772_s30 = sld [smem:[#allocation19_spill]]  ;;  %p1136_p0 = pnand %p1073_p12, %p1529_p11 }
 0x2f1   : > { %s1774_s5 = sld [smem:[#allocation21_spill]] }
 0x2f2   : > { %p1137_p1 = pneg %p1136_p0 }
 0x2f6   : > { %s913_s6 = sand.u32 1, %s1772_s30  }
 0x2f7   : > { %s914_s8 = scalar_lea.sflag [#allocation8], %s913_s6 }
 0x2f8   : > { %1408 = dma.done.wait (%p1137_p1), %s914_s8, 512  }
 0x2f9   : > { %1410 = vsyncadd (%p1137_p1), %s914_s8, 4294966784  ;;  %s26_s20 = sadd.s32 1, %s1774_s5   ;;  %s1775_s24 = sld [smem:[#allocation20_spill]] }
 0x2fa   : > { %p23_p2 = scmp.ge.s32.totalorder %s26_s20, 4   ;;  %s1776_s17 = sld [smem:[#allocation23_spill]] }
 0x2fb   : > { %s1777_s28 = sld [smem:[#allocation22_spill]]  ;;  %s1778_s15 = smov %s1417_s16 }
 0x2fc   : > { %s1780_s18 = smov %s1429_s19 }
 0x2fd   :  { %25 = sbr.rel (!%p23_p2) target bundleno = 13 (0xd), region = 126 }
 0x2ff   : > { %s1779_s16 = smov %s1775_s24 }
 0x301   : > { %s1781_s19 = smov %s1777_s28 }
 0x302   :  { %920 = vsyncpa [#allocation7], 1 }
 0x303   :  { %922 = vsyncpa [#allocation7 + $0x1], 1 }
 0x304   :  { %923 = vsyncpa [#allocation10], 1 }
 0x305   :  { %925 = vsyncpa [#allocation10 + $0x1], 1 }
 0x306   :  { %926 = vsyncpa [#allocation13], 1 }
 0x307   :  { %928 = vsyncpa [#allocation13 + $0x1], 1 }
 0x308   :  { %929 = vsyncpa [#allocation8], 1 }
 0x309   :  { %931 = vsyncpa [#allocation8 + $0x1], 1 }

</bundles_post_ra>
